<compile_context>
chip_gen: v7x
topology: tpu7x:2x2x1
jax: 0.10.0
libtpu: 0.0.40
codegen_flags: <defaults>
</compile_context>

<pallas_src>
import functools

import numpy as np
import jax
import jax.numpy as jnp
from jax import lax
from jax.experimental import pallas as pl
from jax.experimental.pallas import tpu as pltpu

LN_EPS = 1e-6
VMEM_LIMIT_BYTES = 32 * 1024 * 1024   # conservative: fits v5e/v6e/v7x scoped VMEM


def _pick_tile_t(T, max_tile, grain):
    """Largest row-tile that is a multiple of `grain`, <= max_tile, and divides T."""
    if T % grain != 0:
        return T  # single full block (full-dim blocks are exempt from the (8,128) rule)
    t = max(grain, min(max_tile, T))
    t -= t % grain
    while T % t:
        t -= grain
    return t


def _layer_norm(y, w, b):
    """f32 LayerNorm over the last axis (matches nn.LayerNorm(eps=1e-6))."""
    mu = jnp.mean(y, axis=-1, keepdims=True)
    yc = y - mu
    var = jnp.mean(yc * yc, axis=-1, keepdims=True)
    return yc * lax.rsqrt(var + LN_EPS) * w + b


# ---------------- kernel 1: K / V projections (row-tiled, pipelined) ----------------
def _kv_proj_kernel(cd, x_ref, wk_ref, wv_ref, k_ref, v_ref):
    x = x_ref[...].astype(cd)
    k_ref[...] = jnp.dot(x, wk_ref[...],
                         preferred_element_type=jnp.float32).astype(k_ref.dtype)
    v_ref[...] = jnp.dot(x, wv_ref[...],
                         preferred_element_type=jnp.float32).astype(v_ref.dtype)


# ------ kernel 2: attention + residual + LayerNorm + MLP head (row-tiled) ------
def _attn_mlp_kernel(cd, approx,
                     x_ref, k_ref, v_ref, wq_ref, wo_ref,
                     ln1w_ref, ln1b_ref, w1_ref, b1_ref,
                     ln2w_ref, ln2b_ref, w2_ref, b2_ref,
                     attn_ref, score_ref):
    x = x_ref[...]                                           # (tile_t, D) f32

    # --- single-head self-attention: this query tile vs. the full sequence ---
    q = jnp.dot(x.astype(cd), wq_ref[...], preferred_element_type=jnp.float32)
    # energies = Q @ K^T: NT contraction on the last dims (MXU-native, no K transpose)
    energies = lax.dot_general(q.astype(cd), k_ref[...],
                               (((1,), (1,)), ((), ())),
                               preferred_element_type=jnp.float32)   # (tile_t, T)
    m = jnp.max(energies, axis=-1, keepdims=True)
    e = jnp.exp(energies - m)
    attn = e * pl.reciprocal(jnp.sum(e, axis=-1, keepdims=True), approx=approx)
    attn_ref[...] = attn                                     # module returns attn (f32)
    # dropout(p=0.5) -> identity (eval mode)
    y = jnp.dot(attn.astype(cd), v_ref[...], preferred_element_type=jnp.float32)
    y = jnp.dot(y.astype(cd), wo_ref[...], preferred_element_type=jnp.float32)

    # --- residual add + LayerNorm (norm_y), f32 math ---
    y = _layer_norm(y + x, ln1w_ref[...], ln1b_ref[...])

    # --- linear_1 + ReLU + LayerNorm (norm_linear) ---
    h = jnp.dot(y.astype(cd), w1_ref[...],
                preferred_element_type=jnp.float32) + b1_ref[...]
    h = jnp.maximum(h, 0.0)
    h = _layer_norm(h, ln2w_ref[...], ln2b_ref[...])

    # --- linear_2 + sigmoid, emitted as a lane-dense (1, tile_t) row ---
    logits = lax.dot_general(w2_ref[...], h.astype(cd),
                             (((1,), (1,)), ((), ())),
                             preferred_element_type=jnp.float32) + b2_ref[0, 0]
    score_ref[...] = pl.reciprocal(1.0 + jnp.exp(-logits), approx=approx)[None]


def pgl_sum_forward(x, params, *, compute_dtype=jnp.float32, max_tile=256):
    T, D = x.shape
    cd = compute_dtype
    grain = 16 if cd == jnp.bfloat16 else 8            # bf16 packs 2 rows per sublane
    tile_t = _pick_tile_t(T, max_tile, grain)
    num_tiles = T // tile_t
    approx = cd != jnp.float32   # exact EUP reciprocal on the f32 (reference-accuracy) path

    # Cast MXU weight operands in the wrapper so the DMA'd / resident copies shrink.
    wk, wq, wv, wo, w1, w2 = (params[n].astype(cd)
                              for n in ("wk", "wq", "wv", "wo", "w1", "w2"))

    cparams = pltpu.CompilerParams(dimension_semantics=("parallel",),
                                   vmem_limit_bytes=VMEM_LIMIT_BYTES)

    # ---- pass 1: K, V over the full sequence (row-tiled) ----
    k_arr, v_arr = pl.pallas_call(
        functools.partial(_kv_proj_kernel, cd),
        grid=(num_tiles,),
        in_specs=[pl.BlockSpec((tile_t, D), lambda i: (i, 0)),
                  pl.BlockSpec((D, D), lambda i: (0, 0)),
                  pl.BlockSpec((D, D), lambda i: (0, 0))],
        out_specs=(pl.BlockSpec((tile_t, D), lambda i: (i, 0)),
                   pl.BlockSpec((tile_t, D), lambda i: (i, 0))),
        out_shape=(jax.ShapeDtypeStruct((T, D), cd),
                   jax.ShapeDtypeStruct((T, D), cd)),
        compiler_params=cparams,
    )(x, wk, wv)

    # ---- pass 2: per query-row tile attention + residual + LN + MLP head ----
    # K/V/weights use constant index_maps -> fetched once, VMEM-resident across the grid.
    # TODO(synk): for very large T (full K/V no longer VMEM-resident) stream K/V
    # flash-style over a second grid axis; not needed while the module must also return
    # the dense (T, T) attention matrix.
    attn, score = pl.pallas_call(
        functools.partial(_attn_mlp_kernel, cd, approx),
        grid=(num_tiles,),
        in_specs=[
            pl.BlockSpec((tile_t, D), lambda i: (i, 0)),        # x (query rows + residual)
            pl.BlockSpec((T, D), lambda i: (0, 0)),             # K  (resident)
            pl.BlockSpec((T, D), lambda i: (0, 0)),             # V  (resident)
            pl.BlockSpec((D, D), lambda i: (0, 0)),             # Wq
            pl.BlockSpec((D, D), lambda i: (0, 0)),             # Wo (attention out proj)
            pl.BlockSpec((1, D), lambda i: (0, 0)),             # norm_y weight
            pl.BlockSpec((1, D), lambda i: (0, 0)),             # norm_y bias
            pl.BlockSpec((D, D), lambda i: (0, 0)),             # linear_1 weight
            pl.BlockSpec((1, D), lambda i: (0, 0)),             # linear_1 bias
            pl.BlockSpec((1, D), lambda i: (0, 0)),             # norm_linear weight
            pl.BlockSpec((1, D), lambda i: (0, 0)),             # norm_linear bias
            pl.BlockSpec((1, D), lambda i: (0, 0)),             # linear_2 weight (1, D)
            pl.BlockSpec(memory_space=pltpu.MemorySpace.SMEM),  # linear_2 bias scalar
        ],
        out_specs=(pl.BlockSpec((tile_t, T), lambda i: (i, 0)),
                   pl.BlockSpec((1, 1, tile_t), lambda i: (i, 0, 0))),
        out_shape=(jax.ShapeDtypeStruct((T, T), jnp.float32),
                   jax.ShapeDtypeStruct((num_tiles, 1, tile_t), jnp.float32)),
        compiler_params=cparams,
    )(x, k_arr, v_arr, wq, wo,
      params["ln1_w"], params["ln1_b"], w1, params["b1"],
      params["ln2_w"], params["ln2_b"], w2, params["b2"])

    y = score.reshape(1, T)   # contiguous -> free; matches `y.view(1, -1)` in the module
    return y, attn


def init_params(key, D):
    """Deterministic init following PyTorch nn.Linear defaults (U(-1/sqrt(fan_in), ...))."""
    ks = jax.random.split(key, 8)

    def lin_w(k, fan_in, fan_out):
        bound = 1.0 / np.sqrt(fan_in)
        return jax.random.uniform(k, (fan_out, fan_in), jnp.float32, -bound, bound)

    bound = 1.0 / np.sqrt(D)
    Wk = lin_w(ks[0], D, D)
    Wq = lin_w(ks[1], D, D)
    Wv = lin_w(ks[2], D, D)
    Wo = lin_w(ks[3], D, D)
    W1 = lin_w(ks[4], D, D)
    b1 = jax.random.uniform(ks[5], (D,), jnp.float32, -bound, bound)
    W2 = lin_w(ks[6], D, 1)
    b2 = jax.random.uniform(ks[7], (1,), jnp.float32, -bound, bound)

    return dict(
        # projections transposed to (in, out) so the kernel does x @ W
        wk=Wk.T, wq=Wq.T, wv=Wv.T, wo=Wo.T,
        ln1_w=jnp.ones((1, D), jnp.float32), ln1_b=jnp.zeros((1, D), jnp.float32),
        w1=W1.T, b1=b1.reshape(1, D),
        ln2_w=jnp.ones((1, D), jnp.float32), ln2_b=jnp.zeros((1, D), jnp.float32),
        w2=W2,                      # (1, D), contracted on the feature dim inside kernel
        b2=b2.reshape(1, 1),
    )


def reference_forward(x, params):
    """Pure-JAX reference mirroring the PyTorch forward (eval mode)."""
    K = x @ params["wk"]; Q = x @ params["wq"]; V = x @ params["wv"]
    energies = Q @ K.T
    attn = jax.nn.softmax(energies, axis=-1)
    y = attn @ V @ params["wo"] + x
    mu = y.mean(-1, keepdims=True)
    var = ((y - mu) ** 2).mean(-1, keepdims=True)
    y = (y - mu) / jnp.sqrt(var + LN_EPS) * params["ln1_w"] + params["ln1_b"]
    h = jnp.maximum(y @ params["w1"] + params["b1"], 0.0)
    mu2 = h.mean(-1, keepdims=True)
    var2 = ((h - mu2) ** 2).mean(-1, keepdims=True)
    h = (h - mu2) / jnp.sqrt(var2 + LN_EPS) * params["ln2_w"] + params["ln2_b"]
    logits = h @ params["w2"].T + params["b2"]
    return jax.nn.sigmoid(logits).reshape(1, -1), attn


if __name__ == "__main__":
    # small shapes aligned to the hardware grain: T multiple of 16, D = lane width
    T, D = 32, 128
    key = jax.random.PRNGKey(0)
    k_x, k_p = jax.random.split(key)
    x = jax.random.normal(k_x, (T, D), jnp.float32)
    params = init_params(k_p, D)

    y_ref, attn_ref = reference_forward(x, params)

    # f32 path (exact-precision check): grid of 32/16 = 2 row tiles
    y, attn = pgl_sum_forward(x, params, compute_dtype=jnp.float32, max_tile=16)
    y = jax.block_until_ready(y)
    attn = jax.block_until_ready(attn)
    np.testing.assert_allclose(np.asarray(y), np.asarray(y_ref), rtol=1e-4, atol=1e-5)
    np.testing.assert_allclose(np.asarray(attn), np.asarray(attn_ref), rtol=1e-4, atol=1e-5)
    assert y.shape == (1, T) and attn.shape == (T, T)

    # bf16 MXU-operand fast path (v6e/v7x): looser tolerance, same semantics
    y16, attn16 = pgl_sum_forward(x, params, compute_dtype=jnp.bfloat16, max_tile=16)
    y16 = jax.block_until_ready(y16)
    attn16 = jax.block_until_ready(attn16)
    np.testing.assert_allclose(np.asarray(y16), np.asarray(y_ref), rtol=1e-1, atol=5e-2)
    np.testing.assert_allclose(np.asarray(attn16), np.asarray(attn_ref), rtol=1e-1, atol=5e-2)

    # TODO(synk): train-mode dropout and the multi-head / pos_enc / num_segments /
    # fusion branches of MultiAttention are not exercised by the default PGL_SUM config.
    print("KERNEL_OK")
</pallas_src>

<mosaic_0001>
module attributes {stable_mosaic.version = 11 : i64} {
  func.func @_kv_proj_kernel(%arg0: i32, %arg1: memref<16x128xf32, #tpu.memory_space<vmem>>, %arg2: memref<128x128xf32, #tpu.memory_space<vmem>>, %arg3: memref<128x128xf32, #tpu.memory_space<vmem>>, %arg4: memref<16x128xf32, #tpu.memory_space<vmem>>, %arg5: memref<16x128xf32, #tpu.memory_space<vmem>>) attributes {dimension_semantics = [#tpu.dimension_semantics<parallel>], iteration_bounds = array<i64: 2>, scalar_prefetch = 0 : i64, scratch_operands = 0 : i64, tpu.core_type = #tpu.core_type<tc>, window_params = [{transform_indices = @transform_0, window_bounds = array<i64: 16, 128>}, {pipeline_mode = #tpu.pipeline_mode<synchronous>, transform_indices = @transform_1, window_bounds = array<i64: 128, 128>}, {pipeline_mode = #tpu.pipeline_mode<synchronous>, transform_indices = @transform_2, window_bounds = array<i64: 128, 128>}, {transform_indices = @transform_3, window_bounds = array<i64: 16, 128>}, {transform_indices = @transform_4, window_bounds = array<i64: 16, 128>}]} {
    %c0 = arith.constant 0 : index
    %c0_0 = arith.constant 0 : index
    %0 = vector.load %arg1[%c0, %c0_0] : memref<16x128xf32, #tpu.memory_space<vmem>>, vector<16x128xf32>
    %c0_1 = arith.constant 0 : index
    %c0_2 = arith.constant 0 : index
    %1 = vector.load %arg2[%c0_1, %c0_2] : memref<128x128xf32, #tpu.memory_space<vmem>>, vector<128x128xf32>
    %cst = arith.constant dense<0.000000e+00> : vector<16x128xf32>
    %2 = tpu.matmul %0, %1, %cst {dimension_numbers = #tpu.dot_dimension_numbers<[1], [0], [0], [1], [0, 0, 1, 1], [], []>} : vector<16x128xf32>, vector<128x128xf32>, vector<16x128xf32> -> vector<16x128xf32>
    %c0_3 = arith.constant 0 : index
    %c0_4 = arith.constant 0 : index
    %3 = vector.load %arg4[%c0_3, %c0_4] : memref<16x128xf32, #tpu.memory_space<vmem>>, vector<16x128xf32>
    tpu.vector_store %arg4[%c0_3, %c0_4], %2 {strides = array<i32>} : memref<16x128xf32, #tpu.memory_space<vmem>>, vector<16x128xf32>,
    %c0_5 = arith.constant 0 : index
    %c0_6 = arith.constant 0 : index
    %4 = vector.load %arg3[%c0_5, %c0_6] : memref<128x128xf32, #tpu.memory_space<vmem>>, vector<128x128xf32>
    %cst_7 = arith.constant dense<0.000000e+00> : vector<16x128xf32>
    %5 = tpu.matmul %0, %4, %cst_7 {dimension_numbers = #tpu.dot_dimension_numbers<[1], [0], [0], [1], [0, 0, 1, 1], [], []>} : vector<16x128xf32>, vector<128x128xf32>, vector<16x128xf32> -> vector<16x128xf32>
    %c0_8 = arith.constant 0 : index
    %c0_9 = arith.constant 0 : index
    %6 = vector.load %arg5[%c0_8, %c0_9] : memref<16x128xf32, #tpu.memory_space<vmem>>, vector<16x128xf32>
    tpu.vector_store %arg5[%c0_8, %c0_9], %5 {strides = array<i32>} : memref<16x128xf32, #tpu.memory_space<vmem>>, vector<16x128xf32>,
    return
  }
  func.func @transform_0(%arg0: i32) -> (i32, i32) {
    %c0_i32 = arith.constant 0 : i32
    %c0_i32_0 = arith.constant 0 : i32
    return %arg0, %c0_i32 : i32, i32
  }
  func.func @transform_1(%arg0: i32) -> (i32, i32) {
    %c0_i32 = arith.constant 0 : i32
    %c0_i32_0 = arith.constant 0 : i32
    %c0_i32_1 = arith.constant 0 : i32
    return %c0_i32, %c0_i32_0 : i32, i32
  }
  func.func @transform_2(%arg0: i32) -> (i32, i32) {
    %c0_i32 = arith.constant 0 : i32
    %c0_i32_0 = arith.constant 0 : i32
    %c0_i32_1 = arith.constant 0 : i32
    return %c0_i32, %c0_i32_0 : i32, i32
  }
  func.func @transform_3(%arg0: i32) -> (i32, i32) {
    %c0_i32 = arith.constant 0 : i32
    %c0_i32_0 = arith.constant 0 : i32
    return %arg0, %c0_i32 : i32, i32
  }
  func.func @transform_4(%arg0: i32) -> (i32, i32) {
    %c0_i32 = arith.constant 0 : i32
    %c0_i32_0 = arith.constant 0 : i32
    return %arg0, %c0_i32 : i32, i32
  }
}

</mosaic_0001>

<bundles_post_ra>
// kernel: tpu_custom_call.1
= control target key start
LH: loop header
LB: loop body
LE: loop exit
PB: predicated region body
PF: predicated region fallthrough
CT: control target
= control target key end

     0   :  { %10 = vsyncpa [#allocation3], 0  ;;  %s1390_s0 = inlined_call_operand.hbm [shape: f32[32,128], index: 0, kind: input, shape index: {}]   ;;  %s1391_s1 = inlined_call_operand.hbm [shape: f32[128,128], index: 1, kind: input, shape index: {}]   ;;  %s1392_s2 = inlined_call_operand.hbm [shape: f32[128,128], index: 2, kind: input, shape index: {}]   ;;  %s1393_s3 = inlined_call_operand.hbm [shape: f32[32,128], index: 3, kind: output, shape index: {0}]   ;;  %s1394_s4 = inlined_call_operand.hbm [shape: f32[32,128], index: 4, kind: output, shape index: {1}]  }
   0x1   :  { %12 = vsyncpa [#allocation3 + $0x1], 0 }
   0x2   :  { %13 = vsyncpa [#allocation6], 0 }
   0x3   :  { %14 = vsyncpa [#allocation4], 0 }
   0x4   :  { %16 = vsyncpa [#allocation4 + $0x1], 0 }
   0x5   :  { %17 = vsyncpa [#allocation10], 0 }
   0x6   :  { %19 = vsyncpa [#allocation10 + $0x1], 0  ;;  %s1101_s15 = smov 0   ;;  %s1103_s16 = smov 0  }
   0x7   :  { %s1105_s17 = smov 0   ;;  %s1107_s18 = smov 0  }
   0x8 LB: > { %s1122_s19 = sadd.s32 4294967295, %s1065_s18   ;;  %s606_s20 = sadd.s32 4294967294, %s1065_s18   ;;  %s1065_s18 = sphi %s1107_s18, %s1414_s18   ;;  %s1061_s17 = sphi %s1105_s17, %s1413_s17   ;;  %s1057_s16 = sphi %s1103_s16, %s1412_s16   ;;  %s1053_s15 = sphi %s1101_s15, %s1411_s15  }
   0x9   : > { %p45_p0 = scmp.ne.s32.totalorder %s1057_s16, %s1053_s15  ;;  %p1395_p1 = scmp.eq.s32.totalorder %s1122_s19, 0 }
   0xa   : > { %p117_p3 = scmp.eq.s32.totalorder %s606_s20, 1  ;;  %p607_p5 = scmp.ge.s32.totalorder %s1065_s18, 1 }
   0xb   : > { %p1131_p4 = por %p1395_p1, %p45_p0  ;;  %p150_p7 = scmp.lt.s32.totalorder %s1065_s18, 3 }
   0xc   : > { %p1136_p6 = por %p117_p3, %p45_p0  ;;  %s1067_s24 = smov [#allocation5]  }
   0xd   : > { %s1398_s21 = scalar_select %p1131_p4, 1, 0 }
   0xe   : > { %s1399_s22 = scalar_select %p1136_p6, 1, 0 }
   0xf   : > { %p1141_p8 = pnand %p607_p5, %p150_p7  ;;  %s162_s25 = sshll.u32 %s1067_s24, 4  ;;  %s1145_s25 = int_to_ptr.vmem [resolvable:$true] %s162_s25 }
  0x10   : > { %s1068_s27 = smov [#allocation7]   ;;  %s877_s5 = scalar_lea.hbm %s1391_s1, 2048 }
  0x11   : > { %p815_p9 = pneg %p1141_p8  ;;  %s175_s28 = sshll.u32 %s1068_s27, 4  ;;  %s1156_s28 = int_to_ptr.vmem [resolvable:$true] %s175_s28 }
  0x12   : > { %p878_p12 = scmp.ne.s32.totalorder %s1391_s1, %s877_s5  ;;  %p884_p5 = scmp.lt.u32.totalorder %s877_s5, %s1391_s1 }
  0x13   : > { %p1152_p11 = pnand %p815_p9, %p1395_p1 }
  0x15   : > { %p879_p13 = pneg %p1152_p11 }
  0x17   : > { %p880_p0 = pnand %p879_p13, %p878_p12 }
  0x19   : > { %p881_p3 = pneg %p880_p0 }
  0x1b   : > { %p886_p7 = pnand %p884_p5, %p881_p3 }
  0x1d   : > { %889 = shalt.err (!%p886_p7)
}
  0x1e   : > { %s890_s10 = scalar_lea.vmem %s1145_s25, 2048  ;;  %p898_p2 = scmp.lt.s32.totalorder %s1145_s25, %s1145_s25 }
  0x1f   : > { %p891_p9 = scmp.ne.s32.totalorder %s1145_s25, %s890_s10  ;;  %p899_p12 = scmp.lt.s32.totalorder %s890_s10, %s890_s10 }
  0x21   : > { %p893_p10 = pnand %p891_p9, %p879_p13  ;;  %p900_p0 = por %p899_p12, %p898_p2 }
  0x23   : > { %p894_p1 = pneg %p893_p10 }
  0x25   : > { %p901_p6 = pnand %p900_p0, %p894_p1 }
  0x27   : > { %904 = shalt.err (!%p901_p6)
}
  0x28   : > { %s1069_s11 = smov 128   ;;  %s1070_s12 = smov 8  }
  0x29   : > { %818 = dma.hbm_to_vmem [thread:$0]  (!%p1152_p11), %s1391_s1, 2048, %s1145_s25, [#allocation6], %s1069_s11, %s1069_s11, %s1070_s12  }
  0x2a   : > { %s905_s27 = scalar_lea.hbm %s1392_s2, 2048 }
  0x2b   : > { %p906_p1 = scmp.ne.s32.totalorder %s1392_s2, %s905_s27  ;;  %p912_p10 = scmp.lt.u32.totalorder %s905_s27, %s1392_s2 }
  0x2d   : > { %p908_p2 = pnand %p906_p1, %p879_p13 }
  0x2f   : > { %p909_p6 = pneg %p908_p2 }
  0x31   : > { %p914_p3 = pnand %p912_p10, %p909_p6 }
  0x33   : > { %917 = shalt.err (!%p914_p3)
}
  0x34   : > { %s918_s25 = scalar_lea.vmem %s1156_s28, 2048  ;;  %p926_p12 = scmp.lt.s32.totalorder %s1156_s28, %s1156_s28 }
  0x35   : > { %p919_p5 = scmp.ne.s32.totalorder %s1156_s28, %s918_s25  ;;  %p927_p0 = scmp.lt.s32.totalorder %s918_s25, %s918_s25 }
  0x37   : > { %p921_p7 = pnand %p919_p5, %p879_p13  ;;  %p928_p1 = por %p927_p0, %p926_p12 }
  0x39   : > { %p922_p9 = pneg %p921_p7 }
  0x3b   : > { %p929_p2 = pnand %p928_p1, %p922_p9 }
  0x3d   : > { %932 = shalt.err (!%p929_p2)
}
  0x3e   : > { %821 = dma.hbm_to_vmem [thread:$0]  (!%p1152_p11), %s1392_s2, 2048, %s1156_s28, [#allocation6], %s1069_s11, %s1069_s11, %s1070_s12  }
  0x3f   : > { %s1217_s26 = sadd.s32 1, %s1065_s18   ;;  %s32_s9 = sadd.s32 1, %s1061_s17 }
  0x40   : > { %s29_s10 = ssub.s32 %s1065_s18, %s1217_s26  ;;  %p39_p13 = scmp.ne.s32.totalorder %s1061_s17, %s1057_s16 }
  0x41   : > { %p30_p6 = scmp.eq.s32.totalorder %s29_s10, 0  ;;  %p40_p10 = scmp.eq.s32.totalorder %s1065_s18, 0 }
  0x42   : > { %p1402_p3 = scmp.eq.s32.totalorder %s1122_s19, 1  ;;  %p835_p7 = scmp.lt.s32.totalorder %s1065_s18, 2 }
  0x43   : > { %s1233_s14 = scalar_select %p30_p6, %s1061_s17, %s32_s9  }
  0x44   : > { %p1227_p5 = por %p1402_p3, %p39_p13  ;;  %p41_p9 = por %p40_p10, %p39_p13 }
  0x45   : > { %s189_s20 = sand.u32 1, %s1061_s17   ;;  %s628_s28 = sshll.u32 %s1065_s18, 8 }
  0x46   : > { %s1403_s13 = scalar_select %p1227_p5, 1, 0 }
  0x47   : > { %s611_s24 = sshll.u32 %s189_s20, 4  ;;  %s1240_s30 = scalar_lea.hbm %s1390_s0, %s628_s28 }
  0x48   : > { %s193_s5 = scalar_lea.vmem [#allocation2], %s611_s24  ;;  %p1244_p11 = pnand %p835_p7, %p41_p9 }
  0x49   : > { %s200_s6 = sshll.u32 %s193_s5, 4  ;;  %s1248_s7 = scalar_lea.sflag [#allocation3], %s189_s20  ;;  %s1242_s6 = int_to_ptr.vmem [resolvable:$true] %s200_s6 }
  0x4a   : > { %s933_s8 = scalar_lea.hbm %s1240_s30, 256  ;;  %p935_p0 = pneg %p1244_p11 }
  0x4b   : > { %p934_p12 = scmp.ne.s32.totalorder %s1240_s30, %s933_s8  ;;  %s938_s24 = scalar_lea.hbm %s1390_s0, 512 }
  0x4c   : > { %p939_p13 = scmp.lt.u32.totalorder %s1240_s30, %s1390_s0  ;;  %p940_p6 = scmp.lt.u32.totalorder %s938_s24, %s933_s8 }
  0x4d   : > { %p936_p1 = pnand %p935_p0, %p934_p12  ;;  %p942_p3 = scmp.lt.u32.totalorder %s933_s8, %s1240_s30 }
  0x4e   : > { %p941_p10 = por %p940_p6, %p939_p13 }
  0x4f   : > { %p937_p2 = pneg %p936_p1 }
  0x50   : > { %p943_p7 = por %p942_p3, %p941_p10 }
  0x52   : > { %p944_p9 = pnand %p943_p7, %p937_p2 }
  0x54   : > { %947 = shalt.err (!%p944_p9)
}
  0x55   : > { %s948_s20 = scalar_lea.vmem %s1242_s6, 256  ;;  %s1071_s29 = smov [#allocation2]  }
  0x56   : > { %p949_p12 = scmp.ne.s32.totalorder %s1242_s6, %s948_s20  ;;  %s953_s5 = sshll.u32 %s1071_s29, 4  ;;  %s954_s5 = int_to_ptr.vmem [resolvable:$false] %s953_s5 }
  0x57   : > { %s955_s9 = scalar_lea.vmem %s954_s5, 512  ;;  %p956_p4 = scmp.lt.s32.totalorder %s1242_s6, %s954_s5 }
  0x58   : > { %p951_p1 = pnand %p949_p12, %p935_p0  ;;  %p957_p13 = scmp.lt.s32.totalorder %s955_s9, %s948_s20 }
  0x5a   : > { %p952_p5 = pneg %p951_p1  ;;  %p958_p6 = por %p957_p13, %p956_p4 }
  0x5c   : > { %p959_p10 = pnand %p958_p6, %p952_p5 }
  0x5e   : > { %962 = shalt.err (!%p959_p10)
}
  0x5f   : > { %825 = dma.hbm_to_vmem [thread:$0]  (!%p1244_p11), %s1240_s30, 256, %s1242_s6, %s1248_s7, %s1069_s11, %s1069_s11, %s1070_s12  }
  0x60   : > { %212 = sbr.rel (%p1141_p8) target bundleno = 394 (0x18a), region = 32  ;;  %s1282_s8 = sand.u32 (!%p1141_p8), 1, %s1057_s16  }
  0x61   : > { %s1285_s10 = sshll.u32 (!%p1141_p8), %s1282_s8, 4  ;;  %s215_s25 = scalar_lea.sflag (!%p1141_p8), [#allocation3], %s1282_s8 }
  0x62   : > { %s218_s24 = scalar_lea.vmem (!%p1141_p8), [#allocation2], %s1285_s10  ;;  %p1405_p4 = scmp.ne.s32.totalorder (!%p1141_p8), %s1398_s21, 0 }
  0x67   : > { %1036 = dma.done.wait (%p1405_p4), %s215_s25, 256  }
  0x68   : > { %1038 = vsyncadd (%p1405_p4), %s215_s25, 4294967040  ;;  %p1406_p5 = scmp.eq.s32.totalorder %s1122_s19, 0 }
  0x6a   : > { %1040 = dma.done.wait (%p1406_p5), [#allocation6], 4096   ;;  %p1407_p8 = pmov %p1406_p5 }
  0x6b   : > { %v261_v0 = vld [vmem:[#allocation5] sm:$0xff]  ;;  %v262_v1 = vld [vmem:[#allocation5 + $0x8] sm:$0xff]  ;;  %v263_v5 = vld [vmem:[#allocation5 + $0x10] sm:$0xff]  ;;  %s248_s21 = scalar_lea.vmem [#allocation8], %s1285_s10  ;;  %s255_s11 = scalar_lea.vmem [#allocation9], %s1285_s10 }
  0x6c   : > { %1042 = vsyncadd (%p1407_p8), [#allocation6], 4294963200  ;;  %v354_v2 = vld [vmem:[#allocation7] sm:$0xff]  ;;  %v737_v3 = vpack.c.bf16 %v262_v1, %v261_v0  ;;  %v355_v4 = vld [vmem:[#allocation7 + $0x8] sm:$0xff]  ;;  %s466_s23 = sshll.u32 %s248_s21, 4  ;;  %s482_s12 = sshll.u32 %s255_s11, 4  ;;  %s1304_s23 = int_to_ptr.vmem [resolvable:$true] %s466_s23  ;;  %s1306_s12 = int_to_ptr.vmem [resolvable:$true] %s482_s12 }
  0x6d   : > { %v264_v6 = vld [vmem:[#allocation5 + $0x18] sm:$0xff]  ;;  %v769_v7 = vpack.c.bf16 %v355_v4, %v354_v2  ;;  %v356_v9 = vld [vmem:[#allocation7 + $0x10] sm:$0xff]  ;;  %v265_v11 = vld [vmem:[#allocation5 + $0x20] sm:$0xff]  ;;  %s629_s30 = sshll.u32 %s1122_s19, 8  ;;  %s448_s29 = scalar_lea.sflag [#allocation4], %s1282_s8 }
  0x6e   : > { %v741_v8 = vpack.c.bf16 %v264_v6, %v263_v5  ;;  %v357_v10 = vld [vmem:[#allocation7 + $0x18] sm:$0xff]  ;;  %738 = vmatprep.subr.bf16.mxu0 %v737_v3  ;;  %v266_v13 = vld [vmem:[#allocation5 + $0x28] sm:$0xff]  ;;  %v358_v14 = vld [vmem:[#allocation7 + $0x20] sm:$0xff]  ;;  %s1311_s28 = scalar_lea.hbm %s1393_s3, %s629_s30  ;;  %s1316_s19 = scalar_lea.hbm %s1394_s4, %s629_s30 }
  0x6f   : > { %v773_v12 = vpack.c.bf16 %v357_v10, %v356_v9  ;;  %v359_v15 = vld [vmem:[#allocation7 + $0x28] sm:$0xff]  ;;  %770 = vmatprep.subr.bf16.mxu1 %v769_v7  ;;  %740 = vmatpush3.bf16.msra.mxu0 %v737_v3  ;;  %v745_v16 = vpack.c.bf16 %v266_v13, %v265_v11  ;;  %v267_v18 = vld [vmem:[#allocation5 + $0x30] sm:$0xff]  ;;  %v268_v19 = vld [vmem:[#allocation5 + $0x38] sm:$0xff]  ;;  %s963_s5 = scalar_lea.vmem %s1304_s23, 256  ;;  %p1408_p0 = scmp.ne.s32.totalorder %s1403_s13, 0 }
  0x70   : > { %772 = vmatpush3.bf16.msra.mxu1 %v769_v7  ;;  %742 = vmatprep.subr.bf16.mxu0 %v741_v8  ;;  %v777_v17 = vpack.c.bf16 %v359_v15, %v358_v14  ;;  %v360_v20 = vld [vmem:[#allocation7 + $0x30] sm:$0xff]  ;;  %v361_v21 = vld [vmem:[#allocation7 + $0x38] sm:$0xff]  ;;  %v749_v22 = vpack.c.bf16 %v268_v19, %v267_v18  ;;  %v269_v24 = vld [vmem:[#allocation5 + $0x40] sm:$0xff]  ;;  %p964_p11 = scmp.ne.s32.totalorder %s1304_s23, %s963_s5  ;;  %s1072_s9 = smov [#allocation8]  }
  0x71   : > { %774 = vmatprep.subr.bf16.mxu1 %v773_v12  ;;  %v781_v23 = vpack.c.bf16 %v361_v21, %v360_v20  ;;  %v270_v25 = vld [vmem:[#allocation5 + $0x48] sm:$0xff]  ;;  %v259_v26 = vld [vmem:[%s218_s24] sm:$0xff]  ;;  %v272_v32 = vld [vmem:[#allocation5 + $0x58] sm:$0xff]  ;;  %s967_s10 = sshll.u32 %s1072_s9, 4  ;;  %s968_s10 = int_to_ptr.vmem [resolvable:$false] %s967_s10 }
  0x72   : > { %v362_v27 = vld [vmem:[#allocation7 + $0x40] sm:$0xff]  ;;  %v363_v28 = vld [vmem:[#allocation7 + $0x48] sm:$0xff]  ;;  %699 = vmatprep.mubr.f32.mxu0 %v259_v26  ;;  %734 = vmatprep.mubr.f32.mxu1 %v259_v26  ;;  %v753_v29 = vpack.c.bf16 %v270_v25, %v269_v24  ;;  %v271_v31 = vld [vmem:[#allocation5 + $0x50] sm:$0xff]  ;;  %p965_p2 = pnand %p964_p11, %p1408_p0  ;;  %s969_s25 = scalar_lea.vmem %s968_s10, 512 }
  0x73   : > { %744 = vmatpush3.bf16.msra.mxu0 %v741_v8  ;;  %v785_v30 = vpack.c.bf16 %v363_v28, %v362_v27  ;;  %v364_v33 = vld [vmem:[#allocation7 + $0x50] sm:$0xff]  ;;  %v365_v34 = vld [vmem:[#allocation7 + $0x58] sm:$0xff]  ;;  %v757_v35 = vpack.c.bf16 %v272_v32, %v271_v31  ;;  %v273_v37 = vld [vmem:[#allocation5 + $0x60] sm:$0xff]  ;;  %p970_p7 = scmp.lt.s32.totalorder %s1304_s23, %s968_s10  ;;  %p971_p9 = scmp.lt.s32.totalorder %s969_s25, %s963_s5 }
  0x74   : > { %776 = vmatpush3.bf16.msra.mxu1 %v773_v12  ;;  %746 = vmatprep.subr.bf16.mxu0 %v745_v16  ;;  %v789_v36 = vpack.c.bf16 %v365_v34, %v364_v33  ;;  %v274_v38 = vld [vmem:[#allocation5 + $0x68] sm:$0xff]  ;;  %v366_v39 = vld [vmem:[#allocation7 + $0x60] sm:$0xff]  ;;  %v275_v43 = vld [vmem:[#allocation5 + $0x70] sm:$0xff]  ;;  %p966_p3 = pneg %p965_p2 }
  0x75   : > { %778 = vmatprep.subr.bf16.mxu1 %v777_v17  ;;  %v367_v40 = vld [vmem:[#allocation7 + $0x68] sm:$0xff]  ;;  %v761_v41 = vpack.c.bf16 %v274_v38, %v273_v37  ;;  %v276_v44 = vld [vmem:[#allocation5 + $0x78] sm:$0xff]  ;;  %v368_v45 = vld [vmem:[#allocation7 + $0x70] sm:$0xff]  ;;  %p972_p12 = por %p971_p9, %p970_p7 }
  0x76   : > { %v793_v42 = vpack.c.bf16 %v367_v40, %v366_v39  ;;  %v369_v46 = vld [vmem:[#allocation7 + $0x78] sm:$0xff]  ;;  %v765_v47 = vpack.c.bf16 %v276_v44, %v275_v43 }
  0x77   : > { %748 = vmatpush3.bf16.msra.mxu0 %v745_v16  ;;  %v797_v48 = vpack.c.bf16 %v369_v46, %v368_v45  ;;  %v260_v49 = vld [vmem:[%s218_s24 + $0x8] sm:$0xff]  ;;  %p973_p1 = pnand %p972_p12, %p966_p3 }
  0x78   : > { %780 = vmatpush3.bf16.msra.mxu1 %v777_v17  ;;  %750 = vmatprep.subr.bf16.mxu0 %v749_v22 }
  0x79   : > { %782 = vmatprep.subr.bf16.mxu1 %v781_v23 }
  0x7b   : > { %752 = vmatpush3.bf16.msra.mxu0 %v749_v22 }
  0x7c   : > { %784 = vmatpush3.bf16.msra.mxu1 %v781_v23  ;;  %754 = vmatprep.subr.bf16.mxu0 %v753_v29 }
  0x7d   : > { %786 = vmatprep.subr.bf16.mxu1 %v785_v30 }
  0x7f   : > { %756 = vmatpush3.bf16.msra.mxu0 %v753_v29 }
  0x80   : > { %788 = vmatpush3.bf16.msra.mxu1 %v785_v30  ;;  %758 = vmatprep.subr.bf16.mxu0 %v757_v35 }
  0x81   : > { %790 = vmatprep.subr.bf16.mxu1 %v789_v36 }
  0x83   : > { %760 = vmatpush3.bf16.msra.mxu0 %v757_v35 }
  0x84   : > { %792 = vmatpush3.bf16.msra.mxu1 %v789_v36  ;;  %762 = vmatprep.subr.bf16.mxu0 %v761_v41 }
  0x85   : > { %794 = vmatprep.subr.bf16.mxu1 %v793_v42 }
  0x87   : > { %764 = vmatpush3.bf16.msra.mxu0 %v761_v41 }
  0x88   : > { %796 = vmatpush3.bf16.msra.mxu1 %v793_v42  ;;  %766 = vmatprep.subr.bf16.mxu0 %v765_v47 }
  0x89   : > { %798 = vmatprep.subr.bf16.mxu1 %v797_v48 }
  0x8b   : > { %768 = vmatpush3.bf16.msra.mxu0 %v765_v47 }
  0x8c   : > { %800 = vmatpush3.bf16.msra.mxu1 %v797_v48 }
  0x8e   : > { %700 = vmatmul.mubr.f32.vlgmr.msra.gmra.mrb[0].mxu0 %v260_v49 }
  0x8f   : > { %735 = vmatmul.mubr.f32.vlgmr.msra.gmra.mrb[0].mxu1 %v260_v49 }
 0x161   : > { %v701_v50 = vpop.f32.mrb[0].mxu0 }
 0x162   : > { %353 = vst [vmem:[%s248_s21 + $0x8] sm:$0xff] %v701_v50  ;;  %v736_v51 = vpop.f32.mrb[0].mxu1  ;;  %v343_v52 = vpop.f32.mrb[1].mxu0 }
 0x163   : > { %446 = vst [vmem:[%s255_s11 + $0x8] sm:$0xff] %v736_v51  ;;  %352 = vst [vmem:[%s248_s21] sm:$0xff] %v343_v52  ;;  %v436_v53 = vpop.f32.mrb[1].mxu1 }
 0x164   : > { %445 = vst [vmem:[%s255_s11] sm:$0xff] %v436_v53 }
 0x165   : > { %976 = shalt.err (!%p973_p1)
}
 0x166   : > { %s977_s24 = scalar_lea.hbm %s1311_s28, 256  ;;  %s981_s30 = scalar_lea.hbm %s1393_s3, 512 }
 0x167   : > { %p978_p13 = scmp.ne.s32.totalorder %s1311_s28, %s977_s24  ;;  %p982_p4 = scmp.lt.u32.totalorder %s1311_s28, %s1393_s3 }
 0x168   : > { %p983_p5 = scmp.lt.u32.totalorder %s981_s30, %s977_s24  ;;  %p985_p11 = scmp.lt.u32.totalorder %s977_s24, %s1311_s28 }
 0x169   : > { %p979_p6 = pnand %p978_p13, %p1408_p0 }
 0x16a   : > { %p984_p8 = por %p983_p5, %p982_p4 }
 0x16b   : > { %p980_p10 = pneg %p979_p6 }
 0x16c   : > { %p986_p2 = por %p985_p11, %p984_p8 }
 0x16e   : > { %p987_p3 = pnand %p986_p2, %p980_p10 }
 0x170   : > { %990 = shalt.err (!%p987_p3)
}
 0x171   : > { %s1073_s27 = smov 128   ;;  %s1074_s20 = smov 8  }
 0x172   : > { %811 = dma.vmem_to_hbm [thread:$0]  (%p1408_p0), %s1304_s23, 256, %s1311_s28, %s448_s29, %s1073_s27, %s1073_s27, %s1074_s20  }
 0x173   : > { %s453_s5 = scalar_lea.sflag [#allocation10], %s1282_s8  ;;  %s991_s9 = scalar_lea.vmem %s1306_s12, 256 }
 0x174   : > { %p992_p7 = scmp.ne.s32.totalorder %s1306_s12, %s991_s9  ;;  %s1075_s10 = smov [#allocation9]  }
 0x175   : > { %s995_s25 = sshll.u32 %s1075_s10, 4  ;;  %s996_s25 = int_to_ptr.vmem [resolvable:$false] %s995_s25 }
 0x176   : > { %p993_p9 = pnand %p992_p7, %p1408_p0  ;;  %s997_s24 = scalar_lea.vmem %s996_s25, 512 }
 0x177   : > { %p998_p1 = scmp.lt.s32.totalorder %s1306_s12, %s996_s25  ;;  %p999_p13 = scmp.lt.s32.totalorder %s997_s24, %s991_s9 }
 0x178   : > { %p994_p12 = pneg %p993_p9 }
 0x179   : > { %p1000_p6 = por %p999_p13, %p998_p1 }
 0x17b   : > { %p1001_p10 = pnand %p1000_p6, %p994_p12 }
 0x17d   : > { %1004 = shalt.err (!%p1001_p10)
}
 0x17e   : > { %s1005_s23 = scalar_lea.hbm %s1316_s19, 256  ;;  %s1009_s21 = scalar_lea.hbm %s1394_s4, 512 }
 0x17f   : > { %p1006_p4 = scmp.ne.s32.totalorder %s1316_s19, %s1005_s23  ;;  %p1010_p11 = scmp.lt.u32.totalorder %s1316_s19, %s1394_s4 }
 0x180   : > { %p1011_p2 = scmp.lt.u32.totalorder %s1009_s21, %s1005_s23  ;;  %p1013_p7 = scmp.lt.u32.totalorder %s1005_s23, %s1316_s19 }
 0x181   : > { %p1007_p5 = pnand %p1006_p4, %p1408_p0 }
 0x182   : > { %p1012_p3 = por %p1011_p2, %p1010_p11 }
 0x183   : > { %p1008_p8 = pneg %p1007_p5 }
 0x184   : > { %p1014_p9 = por %p1013_p7, %p1012_p3 }
 0x186   : > { %p1015_p12 = pnand %p1014_p9, %p1008_p8 }
 0x188   : > { %1018 = shalt.err (!%p1015_p12)
}
 0x189   : > { %812 = dma.vmem_to_hbm [thread:$0]  (%p1408_p0), %s1306_s12, 256, %s1316_s19, %s453_s5, %s1073_s27, %s1073_s27, %s1074_s20  }
 0x18a PF: > { %s497_s6 = sand.u32 1, %s1053_s15   ;;  %p1409_p1 = scmp.ne.s32.totalorder %s1399_s22, 0 }
 0x18b   : > { %p1410_p13 = scmp.ge.s32.totalorder %s1065_s18, 2  ;;  %s498_s7 = scalar_lea.sflag [#allocation4], %s497_s6 }
 0x18d   : > { %p827_p6 = pnand %p1410_p13, %p1409_p1 }
 0x18f   : > { %1044 = dma.done.wait (!%p827_p6), %s498_s7, 256  }
 0x190   : > { %1046 = vsyncadd (!%p827_p6), %s498_s7, 4294967040  ;;  %s507_s13 = scalar_lea.sflag [#allocation10], %s497_s6 }
 0x191   : > { %1048 = dma.done.wait (!%p827_p6), %s507_s13, 256  }
 0x192   : > { %1050 = vsyncadd (!%p827_p6), %s507_s13, 4294967040  ;;  %p22_p0 = scmp.ge.s32.totalorder %s1217_s26, 4   ;;  %s1411_s15 = smov %s1057_s16 }
 0x193   : > { %s1412_s16 = smov %s1061_s17  ;;  %s1413_s17 = smov %s1233_s14 }
 0x194   : > { %s1414_s18 = smov %s1217_s26  ;;  %24 = sbr.rel (!%p22_p0) target bundleno = 8 (0x8), region = 102 }
 0x19b   :  { %512 = vsyncpa [#allocation3], 1 }
 0x19c   :  { %514 = vsyncpa [#allocation3 + $0x1], 1 }
 0x19d   :  { %515 = vsyncpa [#allocation6], 1 }
 0x19e   :  { %516 = vsyncpa [#allocation4], 1 }
 0x19f   :  { %518 = vsyncpa [#allocation4 + $0x1], 1 }
 0x1a0   :  { %519 = vsyncpa [#allocation10], 1 }
 0x1a1   :  { %521 = vsyncpa [#allocation10 + $0x1], 1 }

</bundles_post_ra>
